<compile_context>
chip_gen: v5e
topology: v5e:2x2
jax: 0.10.0
libtpu: 0.0.40
codegen_flags: <defaults>
</compile_context>

<pallas_src>
import functools
import math

import jax
import jax.numpy as jnp
from jax import lax
from jax.experimental import pallas as pl
from jax.experimental.pallas import tpu as pltpu

_NEG_INF = -1e30


def _round_up(x, m):
    return (x + m - 1) // m * m


def _cdiv(a, b):
    return -(-a // b)


# ---------------------------------------------------------------------------
# Main kernel: MagFace forward with online logsumexp over class tiles.
# ---------------------------------------------------------------------------
def _magface_kernel(x_ref, w_ref, sw_ref, labels_ref, out_ref,
                    xb_ref, m_ref, l_ref, tz_ref, *,
                    scale, inv_scale, cos_m, sin_m, cut_off, ada_m,
                    num_padded_cols):
    ci = pl.program_id(1)
    last_c = pl.num_programs(1) - 1

    @pl.when(ci == 0)
    def _init():
        # Normalize the feature rows once per row tile (hoisted out of the
        # class loop) and cache the bf16 MXU operand in VMEM scratch.
        x = x_ref[...].astype(jnp.float32)                          # (tn, D)
        ss = jnp.sum(x * x, axis=-1, keepdims=True)
        inv = lax.rsqrt(jnp.maximum(ss, 1e-24))                      # 1/max(||x||,1e-12)
        xb_ref[...] = (x * inv).astype(xb_ref.dtype)
        m_ref[...] = jnp.full_like(m_ref, _NEG_INF)
        l_ref[...] = jnp.zeros_like(l_ref)
        tz_ref[...] = jnp.zeros_like(tz_ref)

    # cos_theta * scale for this (row, class) tile: NT matmul on the MXU with
    # raw bf16 weights; the per-class f32 scale/||w_j|| is folded in after.
    # TODO(synk): if the bundle dump shows a per-tile relayout on the w
    # operand, feed w pre-transposed as (D, C) and use a canonical NN dot.
    z = lax.dot_general(xb_ref[...], w_ref[...],
                        dimension_numbers=(((1,), (1,)), ((), ())),
                        preferred_element_type=jnp.float32)          # (tn, tc) f32
    z = z * sw_ref[...]                                              # (1, tc) bcast

    labels = labels_ref[...]                                         # (tn, 1) int32
    col_ids = ci * z.shape[1] + lax.broadcasted_iota(jnp.int32, (1, z.shape[1]), 1)
    is_tgt = col_ids == labels                                       # (tn, tc)

    # Accumulate the raw target logit (scale space); exactly one hit per row.
    tz_ref[...] += jnp.sum(jnp.where(is_tgt, z, 0.0), axis=-1, keepdims=True)

    # Online logsumexp over ALL columns; the target and the (exactly-zero)
    # padded-column logits are fixed up at finalize.
    m_prev = m_ref[...]
    m_new = jnp.maximum(m_prev, jnp.max(z, axis=-1, keepdims=True))
    l_ref[...] = (l_ref[...] * jnp.exp(m_prev - m_new)
                  + jnp.sum(jnp.exp(z - m_new), axis=-1, keepdims=True))
    m_ref[...] = m_new

    @pl.when(ci == last_c)
    def _finalize():
        m_i = m_ref[...]
        tz = tz_ref[...]                                             # raw target logit
        # Clamp only the target cosine (matches the reference clamp where it
        # matters for the margin / sqrt(1 - t^2) path).
        t = jnp.clip(tz * inv_scale, -1.0, 1.0)
        sin_t = jnp.sqrt(1.0 - t * t + 1e-05)
        t_m = t * cos_m - sin_t * sin_m
        t_m = jnp.where(t > cut_off, t_m, t - sin_t * ada_m)         # easy_margin=False
        tgt_new = scale * t_m

        # Swap the raw target term for the margin one; remove padded columns
        # (their logits are exactly 0.0 by construction: zero-padded w and sw).
        rest = l_ref[...] - jnp.exp(tz - m_i)
        if num_padded_cols:                                          # static
            rest = rest - num_padded_cols * jnp.exp(-m_i)
        denom = jnp.maximum(rest, 0.0) + jnp.exp(tgt_new - m_i)
        out_ref[...] = m_i + jnp.log(denom) - tgt_new                # per-row CE


def magface_loss(x, w, labels, *,
                 l_a=10.0, u_a=110.0, l_margin=0.45, u_margin=0.8, scale=32.0,
                 block_n=512, block_c=1024):
    """x: (..., D) features, w: (C, D) class weights, labels: (...,) int."""
    d = x.shape[-1]
    x2 = jnp.reshape(x, (-1, d))
    n = x2.shape[0]
    c = w.shape[0]

    # Row tile: native bf16 sublane granularity (16).  Ensure >= 2 programs on
    # the "parallel" row axis whenever possible so both v7x TensorCores work.
    n16 = _round_up(n, 16)
    tn = min(block_n, n16)
    if n16 >= 32 and _cdiv(n, tn) < 2:
        tn = _round_up(_cdiv(n16, 2), 16)
    tc = min(block_c, _round_up(c, 128))
    n_pad = _round_up(n, tn)
    c_pad = _round_up(c, tc)

    # bf16 on the HBM->VMEM streams; all accumulation stays f32 in-kernel.
    xb = x2.astype(jnp.bfloat16)
    wb = w.astype(jnp.bfloat16)
    labels2 = jnp.reshape(labels, (-1, 1)).astype(jnp.int32)

    # Per-class inverse norms folded into the logit scale (no normalized copy
    # of w is ever written back to HBM).
    w_f32 = w.astype(jnp.float32)
    inv_wn = lax.rsqrt(jnp.maximum(jnp.sum(w_f32 * w_f32, axis=-1), 1e-24))
    sw = (float(scale) * inv_wn).reshape(1, c).astype(jnp.float32)

    if n_pad != n:
        xb = jnp.pad(xb, ((0, n_pad - n), (0, 0)))
        labels2 = jnp.pad(labels2, ((0, n_pad - n), (0, 0)))
    if c_pad != c:
        wb = jnp.pad(wb, ((0, c_pad - c), (0, 0)))
        sw = jnp.pad(sw, ((0, 0), (0, c_pad - c)))   # padded columns -> logit 0

    # The reference module norms the *already normalized* features, so
    # x_norm == clamp(1, l_a, u_a) is a compile-time constant and the adaptive
    # margin / loss_G collapse to constants.
    # TODO(synk): canonical MagFace uses the pre-normalization magnitude; the
    # reference module does not, so we match the module (exact for nonzero
    # rows; an all-zero feature row clamps 0 -> l_a, same constant for l_a>=1).
    x_norm_c = min(max(1.0, float(l_a)), float(u_a))
    ada = ((float(u_margin) - float(l_margin)) / (float(u_a) - float(l_a))
           * (x_norm_c - float(l_a)) + float(l_margin))
    g_const = x_norm_c / float(u_a) ** 2 + 1.0 / x_norm_c

    kernel = functools.partial(
        _magface_kernel,
        scale=float(scale), inv_scale=1.0 / float(scale),
        cos_m=math.cos(ada), sin_m=math.sin(ada),
        cut_off=math.cos(math.pi - ada), ada_m=ada,
        num_padded_cols=c_pad - c)

    # VMEM allowance derived from the tiles, capped at 48 MiB (safe on v7x's
    # 64 MiB physical VMEM, trivial headroom on v5e/v6e's 128 MiB).
    vmem_est = (2 * 2 * d * (tn + tc)      # x / w bf16 tiles, double-buffered
                + 2 * 2 * 4 * tc           # (1, tc) f32 scale tile, double-buffered
                + 2 * tn * d               # cached normalized rows (bf16 scratch)
                + 6 * tn * tc * 4          # in-flight (tn, tc) f32 temporaries
                + 16 * tn)                 # per-row scratch / output
    vmem_limit = int(min(max(vmem_est, 32 << 20), 48 << 20))

    per_row = pl.pallas_call(
        kernel,
        out_shape=jax.ShapeDtypeStruct((n_pad, 1), jnp.float32),
        grid_spec=pltpu.PrefetchScalarGridSpec(
            num_scalar_prefetch=0,
            grid=(n_pad // tn, c_pad // tc),           # rows outer, classes inner
            in_specs=[
                pl.BlockSpec((tn, d), lambda ni, ci: (ni, 0)),   # features
                pl.BlockSpec((tc, d), lambda ni, ci: (ci, 0)),   # raw class weights
                pl.BlockSpec((1, tc), lambda ni, ci: (0, ci)),   # scale/||w_j||
                pl.BlockSpec((tn, 1), lambda ni, ci: (ni, 0)),   # labels
            ],
            out_specs=pl.BlockSpec((tn, 1), lambda ni, ci: (ni, 0)),
            scratch_shapes=[
                pltpu.VMEM((tn, d), jnp.bfloat16),   # cached normalized bf16 rows
                pltpu.VMEM((tn, 1), jnp.float32),    # running max  m_i
                pltpu.VMEM((tn, 1), jnp.float32),    # running sum  l_i
                pltpu.VMEM((tn, 1), jnp.float32),    # raw target logit
            ],
        ),
        compiler_params=pltpu.CompilerParams(
            dimension_semantics=("parallel", "arbitrary"),
            vmem_limit_bytes=vmem_limit),
    )(xb, wb, sw, labels2)

    # TODO(synk): the PyTorch module asserts mask.sum() == N (labels in range);
    # validate labels on the host if needed (no in-kernel assert).
    return jnp.sum(per_row[:n, 0]) / n + g_const


# ---------------------------------------------------------------------------
# Pure-JAX references.
# ---------------------------------------------------------------------------
def _magface_ref(x, w, labels, *,
                 l_a=10.0, u_a=110.0, l_margin=0.45, u_margin=0.8, scale=32.0,
                 mxu_dtype=None, fold_w_norm=False):
    """Mirrors the PyTorch forward; optional bf16 rounding of MXU operands."""
    d = x.shape[-1]
    x = jnp.reshape(x, (-1, d)).astype(jnp.float32)
    w = w.astype(jnp.float32)
    xn = x / jnp.maximum(jnp.linalg.norm(x, axis=-1, keepdims=True), 1e-12)
    x_norm = jnp.clip(jnp.linalg.norm(xn, axis=-1, keepdims=True), l_a, u_a)
    ada = (u_margin - l_margin) / (u_a - l_a) * (x_norm - l_a) + l_margin
    cos_m, sin_m = jnp.cos(ada), jnp.sin(ada)
    w_norm = jnp.maximum(jnp.linalg.norm(w, axis=-1, keepdims=True), 1e-12)
    if mxu_dtype is not None and fold_w_norm:
        # Mirrors the kernel: raw bf16 weights on the MXU, f32 1/||w|| after.
        cos_theta = jnp.dot(xn.astype(mxu_dtype), w.astype(mxu_dtype).T,
                            preferred_element_type=jnp.float32) / w_norm.T
    elif mxu_dtype is not None:
        wn = w / w_norm
        cos_theta = jnp.dot(xn.astype(mxu_dtype), wn.astype(mxu_dtype).T,
                            preferred_element_type=jnp.float32)
    else:
        cos_theta = xn @ (w / w_norm).T
    cos_theta = jnp.clip(cos_theta, -1.0, 1.0)
    sin_theta = jnp.sqrt(1.0 - cos_theta ** 2 + 1e-05)
    ctm = cos_theta * cos_m - sin_theta * sin_m
    cut = jnp.cos(math.pi - ada)
    ctm = jnp.where(cos_theta > cut, ctm, cos_theta - sin_theta * ada)
    mask = jax.nn.one_hot(labels.reshape(-1), w.shape[0], dtype=jnp.float32)
    out = (mask * ctm + (1.0 - mask) * cos_theta) * scale
    lse = jax.scipy.special.logsumexp(out, axis=-1)
    ce = jnp.mean(lse - jnp.sum(mask * out, axis=-1))
    g = jnp.mean(1.0 / u_a ** 2 * x_norm + 1.0 / x_norm)
    return ce + g


if __name__ == "__main__":
    key = jax.random.PRNGKey(0)
    kx, kw, kl = jax.random.split(key, 3)

    B, T, D, C = 2, 4, 32, 16            # features reshape to N = B*T = 8 rows
    x = jax.random.normal(kx, (B, T, D), dtype=jnp.float32)
    w = jax.random.normal(kw, (C, D), dtype=jnp.float32)     # class weights (C, D)
    labels = jax.random.randint(kl, (B * T,), 0, C, dtype=jnp.int32)

    loss = magface_loss(x, w, labels)
    jax.block_until_ready(loss)

    # Tight check: reference mirrors the kernel's precision choices
    # (bf16 MXU operands with the f32 per-class inverse norm folded in after).
    x_b = x.astype(jnp.bfloat16).astype(jnp.float32)
    w_b = w.astype(jnp.bfloat16).astype(jnp.float32)
    ref_bf16 = _magface_ref(x_b, w_b, labels, mxu_dtype=jnp.bfloat16,
                            fold_w_norm=True)
    assert jnp.allclose(loss, ref_bf16, rtol=1e-2, atol=1e-2), (loss, ref_bf16)

    # Loose check against the full-f32 reference (bf16 MXU rounding tolerance).
    ref_f32 = _magface_ref(x, w, labels)
    assert jnp.allclose(loss, ref_f32, rtol=5e-2, atol=5e-2), (loss, ref_f32)

    print("KERNEL_OK")
</pallas_src>

<mosaic_0001>
module attributes {stable_mosaic.version = 11 : i64} {
  func.func @_magface_kernel(%arg0: i32, %arg1: i32, %arg2: memref<16x32xbf16, #tpu.memory_space<vmem>>, %arg3: memref<128x32xbf16, #tpu.memory_space<vmem>>, %arg4: memref<1x128xf32, #tpu.memory_space<vmem>>, %arg5: memref<16x1xi32, #tpu.memory_space<vmem>>, %arg6: memref<16x1xf32, #tpu.memory_space<vmem>>, %arg7: memref<16x32xbf16, #tpu.memory_space<vmem>>, %arg8: memref<16x1xf32, #tpu.memory_space<vmem>>, %arg9: memref<16x1xf32, #tpu.memory_space<vmem>>, %arg10: memref<16x1xf32, #tpu.memory_space<vmem>>) attributes {dimension_semantics = [#tpu.dimension_semantics<parallel>, #tpu.dimension_semantics<arbitrary>], iteration_bounds = array<i64: 1, 1>, scalar_prefetch = 0 : i64, scratch_operands = 4 : i64, tpu.core_type = #tpu.core_type<tc>, window_params = [{transform_indices = @transform_0, window_bounds = array<i64: 16, 32>}, {transform_indices = @transform_1, window_bounds = array<i64: 128, 32>}, {transform_indices = @transform_2, window_bounds = array<i64: 1, 128>}, {transform_indices = @transform_3, window_bounds = array<i64: 16, 1>}, {transform_indices = @transform_4, window_bounds = array<i64: 16, 1>}]} {
    %c0_i32 = arith.constant 0 : i32
    %0 = arith.cmpi eq, %arg1, %c0_i32 : i32
    %1 = arith.extui %0 : i1 to i32
    %c0_i32_0 = arith.constant 0 : i32
    %2 = arith.cmpi ne, %1, %c0_i32_0 : i32
    scf.if %2 {
      %c0_26 = arith.constant 0 : index
      %c0_27 = arith.constant 0 : index
      %43 = vector.load %arg2[%c0_26, %c0_27] : memref<16x32xbf16, #tpu.memory_space<vmem>>, vector<16x32xbf16>
      %44 = arith.extf %43 : vector<16x32xbf16> to vector<16x32xf32>
      %45 = arith.mulf %44, %44 : vector<16x32xf32>
      %cst_28 = arith.constant dense<0.000000e+00> : vector<16xf32>
      %46 = vector.multi_reduction <add>, %45, %cst_28 [1] : vector<16x32xf32> to vector<16xf32>
      %47 = vector.shape_cast %46 : vector<16xf32> to vector<16x1xf32>
      %cst_29 = arith.constant 1.000000e-24 : f32
      %48 = vector.broadcast %cst_29 : f32 to vector<16x1xf32>
      %49 = arith.maximumf %47, %48 : vector<16x1xf32>
      %50 = math.rsqrt %49 : vector<16x1xf32>
      %51 = vector.broadcast %50 : vector<16x1xf32> to vector<16x32xf32>
      %52 = arith.mulf %44, %51 : vector<16x32xf32>
      %53 = arith.truncf %52 : vector<16x32xf32> to vector<16x32xbf16>
      %c0_30 = arith.constant 0 : index
      %c0_31 = arith.constant 0 : index
      %54 = vector.load %arg7[%c0_30, %c0_31] : memref<16x32xbf16, #tpu.memory_space<vmem>>, vector<16x32xbf16>
      tpu.vector_store %arg7[%c0_30, %c0_31], %53 {strides = array<i32>} : memref<16x32xbf16, #tpu.memory_space<vmem>>, vector<16x32xbf16>,
      %cst_32 = arith.constant -1.000000e+30 : f32
      %55 = vector.broadcast %cst_32 : f32 to vector<16x1xf32>
      %c0_33 = arith.constant 0 : index
      %c0_34 = arith.constant 0 : index
      %56 = vector.load %arg8[%c0_33, %c0_34] : memref<16x1xf32, #tpu.memory_space<vmem>>, vector<16x1xf32>
      tpu.vector_store %arg8[%c0_33, %c0_34], %55 {strides = array<i32>} : memref<16x1xf32, #tpu.memory_space<vmem>>, vector<16x1xf32>,
      %cst_35 = arith.constant 0.000000e+00 : f32
      %57 = vector.broadcast %cst_35 : f32 to vector<16x1xf32>
      %c0_36 = arith.constant 0 : index
      %c0_37 = arith.constant 0 : index
      %58 = vector.load %arg9[%c0_36, %c0_37] : memref<16x1xf32, #tpu.memory_space<vmem>>, vector<16x1xf32>
      tpu.vector_store %arg9[%c0_36, %c0_37], %57 {strides = array<i32>} : memref<16x1xf32, #tpu.memory_space<vmem>>, vector<16x1xf32>,
      %cst_38 = arith.constant 0.000000e+00 : f32
      %59 = vector.broadcast %cst_38 : f32 to vector<16x1xf32>
      %c0_39 = arith.constant 0 : index
      %c0_40 = arith.constant 0 : index
      %60 = vector.load %arg10[%c0_39, %c0_40] : memref<16x1xf32, #tpu.memory_space<vmem>>, vector<16x1xf32>
      tpu.vector_store %arg10[%c0_39, %c0_40], %59 {strides = array<i32>} : memref<16x1xf32, #tpu.memory_space<vmem>>, vector<16x1xf32>,
    } else {
    }
    %c0 = arith.constant 0 : index
    %c0_1 = arith.constant 0 : index
    %3 = vector.load %arg7[%c0, %c0_1] : memref<16x32xbf16, #tpu.memory_space<vmem>>, vector<16x32xbf16>
    %c0_2 = arith.constant 0 : index
    %c0_3 = arith.constant 0 : index
    %4 = vector.load %arg3[%c0_2, %c0_3] : memref<128x32xbf16, #tpu.memory_space<vmem>>, vector<128x32xbf16>
    %cst = arith.constant dense<0.000000e+00> : vector<16x128xf32>
    %5 = tpu.matmul %3, %4, %cst {dimension_numbers = #tpu.dot_dimension_numbers<[1], [1], [0], [0], [0, 0, 1, 0], [], []>} : vector<16x32xbf16>, vector<128x32xbf16>, vector<16x128xf32> -> vector<16x128xf32>
    %c0_4 = arith.constant 0 : index
    %c0_5 = arith.constant 0 : index
    %6 = vector.load %arg4[%c0_4, %c0_5] : memref<1x128xf32, #tpu.memory_space<vmem>>, vector<1x128xf32>
    %7 = vector.broadcast %6 : vector<1x128xf32> to vector<16x128xf32>
    %8 = arith.mulf %5, %7 : vector<16x128xf32>
    %c0_6 = arith.constant 0 : index
    %c0_7 = arith.constant 0 : index
    %9 = vector.load %arg5[%c0_6, %c0_7] : memref<16x1xi32, #tpu.memory_space<vmem>>, vector<16x1xi32>
    %c128_i32 = arith.constant 128 : i32
    %10 = arith.muli %arg1, %c128_i32 : i32
    %11 = tpu.iota {dimensions = array<i32: 1>} : vector<1x128xi32>
    %12 = vector.broadcast %10 : i32 to vector<1x128xi32>
    %13 = arith.addi %12, %11 : vector<1x128xi32>
    %14 = vector.broadcast %13 : vector<1x128xi32> to vector<16x128xi32>
    %15 = vector.broadcast %9 : vector<16x1xi32> to vector<16x128xi32>
    %16 = arith.cmpi eq, %14, %15 : vector<16x128xi32>
    %c0_8 = arith.constant 0 : index
    %c0_9 = arith.constant 0 : index
    %17 = vector.load %arg10[%c0_8, %c0_9] : memref<16x1xf32, #tpu.memory_space<vmem>>, vector<16x1xf32>
    %cst_10 = arith.constant 0.000000e+00 : f32
    %18 = vector.broadcast %cst_10 : f32 to vector<16x128xf32>
    %19 = arith.select %16, %8, %18 : vector<16x128xi1>, vector<16x128xf32>
    %cst_11 = arith.constant dense<0.000000e+00> : vector<16xf32>
    %20 = vector.multi_reduction <add>, %19, %cst_11 [1] : vector<16x128xf32> to vector<16xf32>
    %21 = vector.shape_cast %20 : vector<16xf32> to vector<16x1xf32>
    %22 = arith.addf %17, %21 : vector<16x1xf32>
    %c0_12 = arith.constant 0 : index
    %c0_13 = arith.constant 0 : index
    %23 = vector.load %arg10[%c0_12, %c0_13] : memref<16x1xf32, #tpu.memory_space<vmem>>, vector<16x1xf32>
    tpu.vector_store %arg10[%c0_12, %c0_13], %22 {strides = array<i32>} : memref<16x1xf32, #tpu.memory_space<vmem>>, vector<16x1xf32>,
    %c0_14 = arith.constant 0 : index
    %c0_15 = arith.constant 0 : index
    %24 = vector.load %arg8[%c0_14, %c0_15] : memref<16x1xf32, #tpu.memory_space<vmem>>, vector<16x1xf32>
    %cst_16 = arith.constant dense<0xFF800000> : vector<16xf32>
    %25 = vector.multi_reduction <maximumf>, %8, %cst_16 [1] : vector<16x128xf32> to vector<16xf32>
    %26 = vector.shape_cast %25 : vector<16xf32> to vector<16x1xf32>
    %27 = arith.maximumf %24, %26 : vector<16x1xf32>
    %c0_17 = arith.constant 0 : index
    %c0_18 = arith.constant 0 : index
    %28 = vector.load %arg9[%c0_17, %c0_18] : memref<16x1xf32, #tpu.memory_space<vmem>>, vector<16x1xf32>
    %29 = arith.subf %24, %27 : vector<16x1xf32>
    %30 = math.exp %29 : vector<16x1xf32>
    %31 = arith.mulf %28, %30 : vector<16x1xf32>
    %32 = vector.broadcast %27 : vector<16x1xf32> to vector<16x128xf32>
    %33 = arith.subf %8, %32 : vector<16x128xf32>
    %34 = math.exp %33 : vector<16x128xf32>
    %cst_19 = arith.constant dense<0.000000e+00> : vector<16xf32>
    %35 = vector.multi_reduction <add>, %34, %cst_19 [1] : vector<16x128xf32> to vector<16xf32>
    %36 = vector.shape_cast %35 : vector<16xf32> to vector<16x1xf32>
    %37 = arith.addf %31, %36 : vector<16x1xf32>
    %c0_20 = arith.constant 0 : index
    %c0_21 = arith.constant 0 : index
    %38 = vector.load %arg9[%c0_20, %c0_21] : memref<16x1xf32, #tpu.memory_space<vmem>>, vector<16x1xf32>
    tpu.vector_store %arg9[%c0_20, %c0_21], %37 {strides = array<i32>} : memref<16x1xf32, #tpu.memory_space<vmem>>, vector<16x1xf32>,
    %c0_22 = arith.constant 0 : index
    %c0_23 = arith.constant 0 : index
    %39 = vector.load %arg8[%c0_22, %c0_23] : memref<16x1xf32, #tpu.memory_space<vmem>>, vector<16x1xf32>
    tpu.vector_store %arg8[%c0_22, %c0_23], %27 {strides = array<i32>} : memref<16x1xf32, #tpu.memory_space<vmem>>, vector<16x1xf32>,
    %c0_i32_24 = arith.constant 0 : i32
    %40 = arith.cmpi eq, %arg1, %c0_i32_24 : i32
    %41 = arith.extui %40 : i1 to i32
    %c0_i32_25 = arith.constant 0 : i32
    %42 = arith.cmpi ne, %41, %c0_i32_25 : i32
    scf.if %42 {
      %c0_26 = arith.constant 0 : index
      %c0_27 = arith.constant 0 : index
      %43 = vector.load %arg8[%c0_26, %c0_27] : memref<16x1xf32, #tpu.memory_space<vmem>>, vector<16x1xf32>
      %c0_28 = arith.constant 0 : index
      %c0_29 = arith.constant 0 : index
      %44 = vector.load %arg10[%c0_28, %c0_29] : memref<16x1xf32, #tpu.memory_space<vmem>>, vector<16x1xf32>
      %cst_30 = arith.constant 3.125000e-02 : f32
      %45 = vector.broadcast %cst_30 : f32 to vector<16x1xf32>
      %46 = arith.mulf %44, %45 : vector<16x1xf32>
      %cst_31 = arith.constant -1.000000e+00 : f32
      %cst_32 = arith.constant 1.000000e+00 : f32
      %47 = vector.broadcast %cst_31 : f32 to vector<16x1xf32>
      %48 = arith.maximumf %47, %46 : vector<16x1xf32>
      %49 = vector.broadcast %cst_32 : f32 to vector<16x1xf32>
      %50 = arith.minimumf %49, %48 : vector<16x1xf32>
      %51 = arith.mulf %50, %50 : vector<16x1xf32>
      %cst_33 = arith.constant 1.000000e+00 : f32
      %52 = vector.broadcast %cst_33 : f32 to vector<16x1xf32>
      %53 = arith.subf %52, %51 : vector<16x1xf32>
      %cst_34 = arith.constant 9.99999974E-6 : f32
      %54 = vector.broadcast %cst_34 : f32 to vector<16x1xf32>
      %55 = arith.addf %53, %54 : vector<16x1xf32>
      %56 = math.sqrt %55 : vector<16x1xf32>
      %cst_35 = arith.constant 0.90044713 : f32
      %57 = vector.broadcast %cst_35 : f32 to vector<16x1xf32>
      %58 = arith.mulf %50, %57 : vector<16x1xf32>
      %cst_36 = arith.constant 0.434965521 : f32
      %59 = vector.broadcast %cst_36 : f32 to vector<16x1xf32>
      %60 = arith.mulf %56, %59 : vector<16x1xf32>
      %61 = arith.subf %58, %60 : vector<16x1xf32>
      %cst_37 = arith.constant -0.90044713 : f32
      %62 = vector.broadcast %cst_37 : f32 to vector<16x1xf32>
      %63 = arith.cmpf ogt, %50, %62 : vector<16x1xf32>
      %cst_38 = arith.constant 4.500000e-01 : f32
      %64 = vector.broadcast %cst_38 : f32 to vector<16x1xf32>
      %65 = arith.mulf %56, %64 : vector<16x1xf32>
      %66 = arith.subf %50, %65 : vector<16x1xf32>
      %67 = arith.select %63, %61, %66 : vector<16x1xi1>, vector<16x1xf32>
      %cst_39 = arith.constant 3.200000e+01 : f32
      %68 = vector.broadcast %cst_39 : f32 to vector<16x1xf32>
      %69 = arith.mulf %68, %67 : vector<16x1xf32>
      %c0_40 = arith.constant 0 : index
      %c0_41 = arith.constant 0 : index
      %70 = vector.load %arg9[%c0_40, %c0_41] : memref<16x1xf32, #tpu.memory_space<vmem>>, vector<16x1xf32>
      %71 = arith.subf %44, %43 : vector<16x1xf32>
      %72 = math.exp %71 : vector<16x1xf32>
      %73 = arith.subf %70, %72 : vector<16x1xf32>
      %cst_42 = arith.constant 0.000000e+00 : f32
      %74 = vector.broadcast %cst_42 : f32 to vector<16x1xf32>
      %75 = arith.subf %74, %43 : vector<16x1xf32>
      %76 = math.exp %75 : vector<16x1xf32>
      %cst_43 = arith.constant 1.120000e+02 : f32
      %77 = vector.broadcast %cst_43 : f32 to vector<16x1xf32>
      %78 = arith.mulf %77, %76 : vector<16x1xf32>
      %79 = arith.subf %73, %78 : vector<16x1xf32>
      %cst_44 = arith.constant 0.000000e+00 : f32
      %80 = vector.broadcast %cst_44 : f32 to vector<16x1xf32>
      %81 = arith.maximumf %79, %80 : vector<16x1xf32>
      %82 = arith.subf %69, %43 : vector<16x1xf32>
      %83 = math.exp %82 : vector<16x1xf32>
      %84 = arith.addf %81, %83 : vector<16x1xf32>
      %85 = math.log %84 : vector<16x1xf32>
      %86 = arith.addf %43, %85 : vector<16x1xf32>
      %87 = arith.subf %86, %69 : vector<16x1xf32>
      %c0_45 = arith.constant 0 : index
      %c0_46 = arith.constant 0 : index
      %88 = vector.load %arg6[%c0_45, %c0_46] : memref<16x1xf32, #tpu.memory_space<vmem>>, vector<16x1xf32>
      tpu.vector_store %arg6[%c0_45, %c0_46], %87 {strides = array<i32>} : memref<16x1xf32, #tpu.memory_space<vmem>>, vector<16x1xf32>,
    } else {
    }
    return
  }
  func.func @transform_0(%arg0: i32, %arg1: i32) -> (i32, i32) {
    %c0_i32 = arith.constant 0 : i32
    %c0_i32_0 = arith.constant 0 : i32
    return %arg0, %c0_i32 : i32, i32
  }
  func.func @transform_1(%arg0: i32, %arg1: i32) -> (i32, i32) {
    %c0_i32 = arith.constant 0 : i32
    %c0_i32_0 = arith.constant 0 : i32
    return %arg1, %c0_i32 : i32, i32
  }
  func.func @transform_2(%arg0: i32, %arg1: i32) -> (i32, i32) {
    %c0_i32 = arith.constant 0 : i32
    %c0_i32_0 = arith.constant 0 : i32
    return %c0_i32, %arg1 : i32, i32
  }
  func.func @transform_3(%arg0: i32, %arg1: i32) -> (i32, i32) {
    %c0_i32 = arith.constant 0 : i32
    %c0_i32_0 = arith.constant 0 : i32
    return %arg0, %c0_i32 : i32, i32
  }
  func.func @transform_4(%arg0: i32, %arg1: i32) -> (i32, i32) {
    %c0_i32 = arith.constant 0 : i32
    %c0_i32_0 = arith.constant 0 : i32
    return %arg0, %c0_i32 : i32, i32
  }
}

</mosaic_0001>

<bundles_post_ra>
// kernel: tpu_custom_call.1
= control target key start
LH: loop header
LB: loop body
LE: loop exit
PB: predicated region body
PF: predicated region fallthrough
CT: control target
= control target key end

     0   :  { %vm27_vm0 = vcmask 261120   ;;  %v447_v30 = vmov 0   ;;  %vm60_vm4 = vcmask 257024   ;;  %vm63_vm8 = vcmask 7168   ;;  %s589_s0 = inlined_call_operand.vmem [shape: bf16[16,32], index: 0, kind: input, shape index: {}]   ;;  %s590_s1 = inlined_call_operand.vmem [shape: bf16[128,32], index: 1, kind: input, shape index: {}]   ;;  %s591_s2 = inlined_call_operand.vmem [shape: f32[1,128], index: 2, kind: input, shape index: {}]   ;;  %s592_s3 = inlined_call_operand.vmem [shape: s32[16,1], index: 3, kind: input, shape index: {}]   ;;  %s593_s4 = inlined_call_operand.vmem [shape: f32[16,1], index: 4, kind: output, shape index: {}]  }
   0x1   :  { %v405_v0 = vld [vmem:[%s589_s0] sm:$0xff]   ;;  %v403_v1 = vld [vmem:[%s590_s1 + $0x38] sm:$0xff]  ;;  %v402_v6 = vld [vmem:[%s590_s1 + $0x30] sm:$0xff]  ;;  %411 = vset.pattern.permute.xlu2 %v447_v30  ;;  %412 = vset.pattern.permute.xlu0 %v447_v30  ;;  %v448_v49 = vmov -1e+30   ;;  %v184_v50 = vlaneseq  ;;  %v449_v59 = vmov 0.0  }
   0x2   :  { %v406_v2 = vunpack.c.l.bf16 %v405_v0  ;;  %v159_v3 = vsel %vm27_vm0, %v403_v1, 0  ;;  %v482_v5 = vunpack.c.h.bf16 %v405_v0  ;;  %v156_v9 = vsel %vm27_vm0, %v402_v6, 0  ;;  %v401_v11 = vld [vmem:[%s590_s1 + $0x28] sm:$0xff]  ;;  %v400_v13 = vld [vmem:[%s590_s1 + $0x20] sm:$0xff]  ;;  %v399_v15 = vld [vmem:[%s590_s1 + $0x18] sm:$0xff]  ;;  %413 = vset.pattern.permute.xlu1 %v447_v30  ;;  %64 = vst.msk [vmem:[#allocation3] sm:$0xff] %vm63_vm8, %v448_v49 }
   0x3   :  { %161 = vmatpush.bf16.xpose.msra.mxu0 %v159_v3  ;;  %v153_v12 = vsel %vm27_vm0, %v401_v11, 0  ;;  %v150_v14 = vsel %vm27_vm0, %v400_v13, 0  ;;  %v147_v16 = vsel %vm27_vm0, %v399_v15, 0  ;;  %v398_v17 = vld [vmem:[%s590_s1 + $0x10] sm:$0xff]  ;;  %v397_v19 = vld [vmem:[%s590_s1 + $0x8] sm:$0xff]  ;;  %v396_v22 = vld [vmem:[%s590_s1] sm:$0xff] }
   0x4   :  { %v25_v4 = vmul.f32 %v406_v2, %v406_v2  ;;  %v26_v8 = vmul.f32 %v482_v5, %v482_v5  ;;  %v144_v18 = vsel %vm27_vm0, %v398_v17, 0  ;;  %v141_v20 = vsel %vm27_vm0, %v397_v19, 0  ;;  %v181_v29 = vld [vmem:[%s592_s3] sm:$0xff]  ;;  %v182_v35 = vld [vmem:[%s592_s3 + $0x8] sm:$0xff]  ;;  %65 = vst.msk [vmem:[#allocation3 + $0x8] sm:$0xff] %vm63_vm8, %v448_v49 }
   0x5   :  { %v138_v24 = vsel %vm27_vm0, %v396_v22, 0  ;;  %189 = vperm.xlu2 %411, %v181_v29   ;;  %v185_v51 = vand.u32 127, %v184_v50  ;;  %v414_v52 = vld [vmem:[%s591_s2] ss:$0 sm:$0xff]  ;;  %68 = vst.msk [vmem:[#allocation5] sm:$0xff] %vm63_vm8, %v449_v59 }
   0x6   :  { %v28_v7 = vsel %vm27_vm0, %v25_v4, 0.0  ;;  %v31_v10 = vsel %vm27_vm0, %v26_v8, 0.0  ;;  %66 = vst.msk [vmem:[#allocation4] sm:$0xff] %vm63_vm8, %v449_v59 }
   0x7   :  { %29 = vadd.xlane.f32.xlu0 %v28_v7  ;;  %67 = vst.msk [vmem:[#allocation4 + $0x8] sm:$0xff] %vm63_vm8, %v449_v59 }
   0x8   :  { %69 = vst.msk [vmem:[#allocation5 + $0x8] sm:$0xff] %vm63_vm8, %v449_v59 }
   0x9   :  { %v533_v61 = vld [vmem:[#allocation3] sm:$0xff] }
   0xb   :  { %162 = vmatpush.bf16.xpose.msra.mxu0 %v156_v9  ;;  %v544_v4 = vld [vmem:[#allocation3 + $0x8] sm:$0xff] }
   0xc   :  { %v196_v62 = vld [vmem:[#allocation5] sm:$0xff] }
   0xd   :  { %192 = vperm.xlu2 %411, %v182_v35  }
   0xf   :  { %32 = vadd.xlane.f32.xlu0 %v31_v10  ;;  %v197_v17 = vld [vmem:[#allocation5 + $0x8] sm:$0xff] }
  0x13   :  { %163 = vmatpush.bf16.xpose.msra.mxu0 %v153_v12 }
  0x1b   :  { %164 = vmatpush.bf16.xpose.msra.mxu0 %v150_v14 }
  0x23   :  { %165 = vmatpush.bf16.xpose.msra.mxu0 %v147_v16 }
  0x2b   :  { %166 = vmatpush.bf16.xpose.msra.mxu0 %v144_v18 }
  0x33   :  { %167 = vmatpush.bf16.xpose.msra.mxu0 %v141_v20 }
  0x3b   :  { %168 = vmatpush.bf16.xpose.msra.mxu0 %v138_v24 }
  0x5f   :  { %v190_v53 = vpop.permute.xlu2 %189 }
  0x60   :  { %vm194_vm9 = vcmp.eq.s32.totalorder %v185_v51, %v190_v53 }
  0x67   :  { %v193_v60 = vpop.permute.xlu2 %192 }
  0x68   :  { %vm195_vm10 = vcmp.eq.s32.totalorder %v185_v51, %v193_v60 }
  0x7a   :  { %v30_v21 = vpop.xlane.xlu0 %29 }
  0x7b   :  { %v34_v23 = vmax.f32 %v30_v21, 1e-24 }
  0x7d   :  { %415 = vrsqrt.f32 %v34_v23  ;;  %vm42_vm2 = vweird.f32 %v34_v23 }
  0x82   :  { %v33_v25 = vpop.xlane.xlu0 %32 }
  0x83   :  { %v416_v26 = vpop.eup %415  ;;  %v35_v27 = vmax.f32 %v33_v25, 1e-24 }
  0x84   :  { %v37_v28 = vmul.f32 %v416_v26, %v34_v23  ;;  %vm43_vm1 = vweird.f32 %v416_v26 }
  0x85   :  { %417 = vrsqrt.f32 %v35_v27  ;;  %vm44_vm3 = vmor %vm42_vm2, %vm43_vm1  ;;  %vm52_vm6 = vweird.f32 %v35_v27 }
  0x86   :  { %v38_v31 = vmul.f32 %v416_v26, %v37_v28 }
  0x88   :  { %v39_v32 = vmul.f32 0.5, %v38_v31 }
  0x8a   :  { %v40_v33 = vsub.f32 1.5, %v39_v32 }
  0x8b   :  { %v418_v34 = vpop.eup %417 }
  0x8c   :  { %v41_v36 = vmul.f32 %v416_v26, %v40_v33  ;;  %v47_v37 = vmul.f32 %v418_v34, %v35_v27  ;;  %vm53_vm5 = vweird.f32 %v418_v34 }
  0x8d   :  { %vm54_vm7 = vmor %vm52_vm6, %vm53_vm5 }
  0x8e   :  { %v45_v38 = vsel %vm44_vm3, %v416_v26, %v41_v36  ;;  %v48_v39 = vmul.f32 %v418_v34, %v47_v37 }
  0x8f   :  { %v56_v40 = vmul.f32 %v406_v2, %v45_v38 }
  0x90   :  { %v49_v41 = vmul.f32 0.5, %v48_v39 }
  0x91   :  { %v58_v42 = vpack.c.bf16 %v56_v40, %v56_v40 }
  0x92   :  { %v50_v43 = vsub.f32 1.5, %v49_v41 }
  0x93   :  { %61 = vst.msk [vmem:[#allocation2] sm:$0xf] %vm60_vm4, %v58_v42 }
  0x94   :  { %v51_v44 = vmul.f32 %v418_v34, %v50_v43 }
  0x96   :  { %v55_v45 = vsel %vm54_vm7, %v418_v34, %v51_v44 }
  0x97   :  { %v57_v46 = vmul.f32 %v482_v5, %v55_v45 }
  0x99   :  { %v59_v47 = vpack.c.bf16 %v57_v46, %v57_v46 }
  0x9b   :  { %62 = vst.msk [vmem:[#allocation2 + $0x4] sm:$0xf] %vm60_vm4, %v59_v47 }
  0xa2   :  { %v395_v48 = vld [vmem:[#allocation2] sm:$0xff] }
  0xa3   :  { %392 = vmatmul.msk.bf16.vlgmr.msra.gmra.mxu0 %vm27_vm0, %v395_v48 }
 0x120   :  { %v170_v54 = vpop.f32.mrf.mxu0 }
 0x121   :  { %v179_v55 = vmul.f32 %v414_v52, %v170_v54 }
 0x123   :  { %211 = vmax.xlane.f32.xlu1 %v179_v55  ;;  %v198_v56 = vsel %vm194_vm9, %v179_v55, 0.0 }
 0x124   :  { %200 = vadd.xlane.f32.xlu2 %v198_v56 }
 0x128   :  { %v172_v57 = vpop.f32.mrf.mxu0 }
 0x129   :  { %v180_v58 = vmul.f32 %v414_v52, %v172_v57 }
 0x12b   :  { %213 = vmax.xlane.f32.xlu1 %v180_v58  ;;  %v199_v8 = vsel %vm195_vm10, %v180_v58, 0.0 }
 0x196   :  { %v212_v63 = vpop.xlane.xlu1 %211 }
 0x197   :  { %v536_v0 = vmax.f32 %v533_v61, %v212_v63  ;;  %v201_v1 = vpop.xlane.xlu2 %200 }
 0x198   :  { %v204_v2 = vadd.f32 %v201_v1, %v196_v62 }
 0x199   :  { %v219_v3 = vsub.f32 %v533_v61, %v536_v0  ;;  %251 = vst.msk [vmem:[#allocation3] sm:$0xff] %vm63_vm8, %v536_v0  ;;  %229 = vperm.xlu0 %412, %v536_v0  }
 0x19a   :  { %207 = vst.msk [vmem:[#allocation5] sm:$0xff] %vm63_vm8, %v204_v2  ;;  %v217_v2 = vld [vmem:[#allocation4] sm:$0xff] }
 0x19b   :  { %v221_v49 = vmul.f32 1.442695, %v219_v3 }
 0x19e   :  { %v214_v5 = vpop.xlane.xlu1 %213 }
 0x19f   :  { %v547_v6 = vmax.f32 %v544_v4, %v214_v5 }
 0x1a1   :  { %v220_v7 = vsub.f32 %v544_v4, %v547_v6  ;;  %252 = vst.msk [vmem:[#allocation3 + $0x8] sm:$0xff] %vm63_vm8, %v547_v6  ;;  %234 = vperm.xlu1 %413, %v547_v6   ;;  %v554_v19 = vld [vmem:[#allocation5] sm:$0xff] }
 0x1a2   :  { %v260_v21 = vmul.f32 0.03125, %v554_v19 }
 0x1a3   :  { %v223_v60 = vmul.f32 1.442695, %v220_v7 }
 0x1a4   :  { %v393_v22 = vclamps-f32 %v260_v21, 1.0 }
 0x1a6   :  { %v266_v24 = vmul.f32 %v393_v22, %v393_v22  ;;  %v296_v52 = vmul.f32 0.90044713, %v393_v22  ;;  %vm302_vm15 = vcmp.gt.f32.partialorder %v393_v22, -0.90044713 }
 0x1a8   :  { %v268_v26 = vsub.f32 1.0, %v266_v24 }
 0x1aa   :  { %v270_v28 = vadd.f32 1e-05, %v268_v26 }
 0x1ac   :  { %vm279_vm11 = vcmp.eq.f32.partialorder %v270_v28, inf  ;;  %v282_v46 = vand.u32 2147483648, %v270_v28  ;;  %vm281_vm12 = vcmp.eq.f32.partialorder %v270_v28, 0.0 }
 0x1cb   :  { %202 = vadd.xlane.f32.xlu1 %v199_v8 }
 0x20b   :  { %v230_v9 = vpop.permute.xlu0 %229 }
 0x20c   :  { %v237_v10 = vsub.f32 %v179_v55, %v230_v9  ;;  %v565_v55 = vld [vmem:[#allocation3] sm:$0xff]  ;;  %v257_v9 = vld [vmem:[#allocation3 + $0x8] sm:$0xff] }
 0x20d   :  { %v322_v59 = vsub.f32 0.0, %v565_v55  ;;  %v314_v1 = vsub.f32 %v554_v19, %v565_v55  ;;  %v323_v7 = vsub.f32 0.0, %v257_v9 }
 0x20e   :  { %v239_v11 = vmul.f32 1.442695, %v237_v10 }
 0x20f   :  { %v324_v5 = vmul.f32 1.442695, %v322_v59  ;;  %v316_v4 = vmul.f32 1.442695, %v314_v1  ;;  %v326_v19 = vmul.f32 1.442695, %v323_v7 }
 0x210   :  { %419 = vpow2.f32 %v239_v11 }
 0x213   :  { %v235_v12 = vpop.permute.xlu1 %234 }
 0x214   :  { %v238_v13 = vsub.f32 %v180_v58, %v235_v12 }
 0x216   :  { %v420_v14 = vpop.eup %419  ;;  %v241_v15 = vmul.f32 1.442695, %v238_v13 }
 0x217   :  { %243 = vadd.xlane.f32.xlu0 %v420_v14 }
 0x218   :  { %421 = vpow2.f32 %v241_v15 }
 0x219   :  { %423 = vrsqrt.f32 %v270_v28 }
 0x21e   :  { %v422_v16 = vpop.eup %421 }
 0x21f   :  { %245 = vadd.xlane.f32.xlu2 %v422_v16  ;;  %v424_v32 = vpop.eup %423 }
 0x220   :  { %v273_v33 = vmul.f32 %v424_v32, %v270_v28 }
 0x222   :  { %v274_v34 = vmul.f32 %v424_v32, %v273_v33 }
 0x224   :  { %v275_v36 = vmul.f32 0.5, %v274_v34 }
 0x226   :  { %v276_v38 = vsub.f32 1.5, %v275_v36 }
 0x228   :  { %v277_v40 = vmul.f32 %v424_v32, %v276_v38 }
 0x22a   :  { %v278_v42 = vmul.f32 %v277_v40, %v270_v28 }
 0x22c   :  { %v280_v44 = vsel %vm279_vm11, %v270_v28, %v278_v42 }
 0x22d   :  { %v283_v47 = vsel %vm281_vm12, %v282_v46, %v280_v44 }
 0x22e   :  { %v298_v50 = vmul.f32 0.43496552, %v283_v47  ;;  %v304_v51 = vmul.f32 0.45, %v283_v47 }
 0x230   :  { %v300_v56 = vsub.f32 %v296_v52, %v298_v50  ;;  %v306_v57 = vsub.f32 %v393_v22, %v304_v51 }
 0x232   :  { %v308_v61 = vsel %vm302_vm15, %v300_v56, %v306_v57 }
 0x233   :  { %v310_v8 = vmul.f32 32.0, %v308_v61 }
 0x235   :  { %v334_v14 = vsub.f32 %v310_v8, %v565_v55 }
 0x23e   :  { %v203_v18 = vpop.xlane.xlu1 %202 }
 0x23f   :  { %v205_v20 = vadd.f32 %v203_v18, %v197_v17  ;;  %v218_v18 = vld [vmem:[#allocation4 + $0x8] sm:$0xff] }
 0x241   :  { %208 = vst.msk [vmem:[#allocation5 + $0x8] sm:$0xff] %vm63_vm8, %v205_v20  ;;  %v336_v20 = vmul.f32 1.442695, %v334_v14 }
 0x248   :  { %v558_v23 = vld [vmem:[#allocation5 + $0x8] sm:$0xff] }
 0x249   :  { %v261_v25 = vmul.f32 0.03125, %v558_v23  ;;  %v315_v17 = vsub.f32 %v558_v23, %v257_v9 }
 0x24b   :  { %v561_v27 = vclamps-f32 %v261_v25, 1.0  ;;  %v318_v25 = vmul.f32 1.442695, %v315_v17 }
 0x24d   :  { %v267_v29 = vmul.f32 %v561_v27, %v561_v27  ;;  %v297_v3 = vmul.f32 0.90044713, %v561_v27  ;;  %vm303_vm0 = vcmp.gt.f32.partialorder %v561_v27, -0.90044713 }
 0x24f   :  { %v269_v30 = vsub.f32 1.0, %v267_v29 }
 0x251   :  { %v271_v31 = vadd.f32 1e-05, %v269_v30 }
 0x253   :  { %425 = vrsqrt.f32 %v271_v31  ;;  %vm291_vm13 = vcmp.eq.f32.partialorder %v271_v31, inf  ;;  %v294_v54 = vand.u32 2147483648, %v271_v31  ;;  %vm293_vm14 = vcmp.eq.f32.partialorder %v271_v31, 0.0 }
 0x254   :  { %427 = vpow2.f32 %v221_v49 }
 0x255   :  { %429 = vpow2.f32 %v223_v60 }
 0x256   :  { %431 = vpow2.f32 %v324_v5 }
 0x257   :  { %433 = vpow2.f32 %v316_v4 }
 0x258   :  { %435 = vpow2.f32 %v326_v19 }
 0x259   :  { %v426_v35 = vpop.eup %425  ;;  %437 = vpow2.f32 %v336_v20 }
 0x25a   :  { %v285_v37 = vmul.f32 %v426_v35, %v271_v31  ;;  %v428_v0 = vpop.eup %427  ;;  %439 = vpow2.f32 %v318_v25 }
 0x25b   :  { %v225_v12 = vmul.f32 %v428_v0, %v217_v2  ;;  %v430_v16 = vpop.eup %429 }
 0x25c   :  { %v286_v39 = vmul.f32 %v426_v35, %v285_v37  ;;  %v226_v22 = vmul.f32 %v430_v16, %v218_v18  ;;  %v432_v24 = vpop.eup %431 }
 0x25d   :  { %v434_v29 = vpop.eup %433  ;;  %v328_v32 = vmul.f32 112.0, %v432_v24 }
 0x25e   :  { %v287_v41 = vmul.f32 0.5, %v286_v39  ;;  %v436_v34 = vpop.eup %435 }
 0x25f   :  { %v438_v36 = vpop.eup %437 }
 0x260   :  { %v288_v43 = vsub.f32 1.5, %v287_v41  ;;  %v440_v38 = vpop.eup %439  ;;  %v329_v41 = vmul.f32 112.0, %v436_v34 }
 0x262   :  { %v289_v45 = vmul.f32 %v426_v35, %v288_v43 }
 0x264   :  { %v290_v48 = vmul.f32 %v289_v45, %v271_v31 }
 0x266   :  { %v292_v53 = vsel %vm291_vm13, %v271_v31, %v290_v48 }
 0x267   :  { %v295_v58 = vsel %vm293_vm14, %v294_v54, %v292_v53 }
 0x268   :  { %v299_v62 = vmul.f32 0.43496552, %v295_v58  ;;  %v305_v63 = vmul.f32 0.45, %v295_v58 }
 0x26a   :  { %v301_v10 = vsub.f32 %v297_v3, %v299_v62  ;;  %v307_v11 = vsub.f32 %v561_v27, %v305_v63 }
 0x26c   :  { %v309_v15 = vsel %vm303_vm0, %v301_v10, %v307_v11 }
 0x26d   :  { %v311_v21 = vmul.f32 32.0, %v309_v15 }
 0x26f   :  { %v335_v30 = vsub.f32 %v311_v21, %v257_v9 }
 0x271   :  { %v338_v33 = vmul.f32 1.442695, %v335_v30 }
 0x273   :  { %441 = vpow2.f32 %v338_v33 }
 0x279   :  { %v442_v44 = vpop.eup %441 }
 0x28a   :  { %v244_v6 = vpop.xlane.xlu0 %243 }
 0x28b   :  { %v247_v13 = vadd.f32 %v244_v6, %v225_v12 }
 0x28d   :  { %249 = vst.msk [vmem:[#allocation4] sm:$0xff] %vm63_vm8, %v247_v13 }
 0x292   :  { %v246_v26 = vpop.xlane.xlu2 %245 }
 0x293   :  { %v248_v28 = vadd.f32 %v246_v26, %v226_v22 }
 0x294   :  { %v312_v27 = vld [vmem:[#allocation4] sm:$0xff] }
 0x295   :  { %v320_v31 = vsub.f32 %v312_v27, %v434_v29  ;;  %250 = vst.msk [vmem:[#allocation4 + $0x8] sm:$0xff] %vm63_vm8, %v248_v28 }
 0x297   :  { %v330_v23 = vsub.f32 %v320_v31, %v328_v32 }
 0x299   :  { %v332_v35 = vmax.f32 %v330_v23, 0.0 }
 0x29b   :  { %v340_v37 = vadd.f32 %v438_v36, %v332_v35 }
 0x29c   :  { %v313_v39 = vld [vmem:[#allocation4 + $0x8] sm:$0xff] }
 0x29d   :  { %443 = vlog2.f32 %v340_v37  ;;  %v321_v40 = vsub.f32 %v313_v39, %v440_v38 }
 0x29f   :  { %v331_v42 = vsub.f32 %v321_v40, %v329_v41 }
 0x2a1   :  { %v333_v43 = vmax.f32 %v331_v42, 0.0 }
 0x2a3   :  { %v444_v45 = vpop.eup %443  ;;  %v341_v46 = vadd.f32 %v442_v44, %v333_v43 }
 0x2a4   :  { %v343_v47 = vmul.f32 0.6931472, %v444_v45 }
 0x2a5   :  { %445 = vlog2.f32 %v341_v46 }
 0x2a6   :  { %v346_v48 = vadd.f32 %v343_v47, %v565_v55 }
 0x2a8   :  { %v348_v49 = vsub.f32 %v346_v48, %v310_v8 }
 0x2aa   :  { %350 = vst.msk [vmem:[%s593_s4] sm:$0xff] %vm63_vm8, %v348_v49 }
 0x2ab   :  { %v446_v50 = vpop.eup %445 }
 0x2ac   :  { %v345_v51 = vmul.f32 0.6931472, %v446_v50 }
 0x2ae   :  { %v347_v52 = vadd.f32 %v345_v51, %v257_v9 }
 0x2b0   :  { %v349_v53 = vsub.f32 %v347_v52, %v311_v21 }
 0x2b2   :  { %351 = vst.msk [vmem:[%s593_s4 + $0x8] sm:$0xff] %vm63_vm8, %v349_v53 }

</bundles_post_ra>
